<compile_context>
chip_gen: v6e
topology: v6e:2x2x1
jax: 0.10.0
libtpu: 0.0.40
codegen_flags: <defaults>
</compile_context>

<pallas_src>
import jax
import jax.numpy as jnp
from jax.experimental import pallas as pl
from jax.experimental.pallas import tpu as pltpu


# --------------------------------------------------------------------------
# Primary path: aliased no-op (zero data movement).
# --------------------------------------------------------------------------
def _noop_kernel(x_ref, o_ref):
    # Output aliases the input HBM buffer; there is nothing to compute or
    # move.  touch() gives the (unwritten) aliased output a fake read+write
    # dependency so it is considered produced by this call.
    del x_ref
    pltpu.touch(o_ref)


def _identity_noop(x):
    return pl.pallas_call(
        _noop_kernel,
        out_shape=jax.ShapeDtypeStruct(x.shape, x.dtype),
        in_specs=[pl.BlockSpec(memory_space=pl.ANY)],   # raw HBM ref, no auto-DMA
        out_specs=pl.BlockSpec(memory_space=pl.ANY),
        input_output_aliases={0: 0},                    # output == input buffer
        compiler_params=pltpu.CompilerParams(has_side_effects=True),
    )(x)


# --------------------------------------------------------------------------
# Fallback path: lane-dense tiled copy (only if the no-op path cannot lower).
# --------------------------------------------------------------------------
def _copy_kernel(x_ref, o_ref):
    o_ref[...] = x_ref[...]


def _sublane(dtype) -> int:
    # Native sublane packing: f32 -> 8 rows/vreg, bf16 -> 16, int8/fp8 -> 32.
    return {4: 8, 2: 16, 1: 32}.get(jnp.dtype(dtype).itemsize, 8)


def _choose_layout(n, dtype):
    """Pick (lane, rows): lane a multiple of 128 dividing n (prefer tileable rows)."""
    sub = _sublane(dtype)
    best = None
    lane = 4096
    while lane >= 128:
        if n % lane == 0:
            rows = n // lane
            if rows % sub == 0:
                return lane, rows
            if best is None:
                best = (lane, rows)
        lane -= 128
    return best


def _choose_row_tile(rows, lane, dtype, target_bytes=8 * 1024 * 1024):
    """Largest divisor of `rows` that is a sublane multiple and <= ~8 MiB/tile."""
    sub = _sublane(dtype)
    itemsize = jnp.dtype(dtype).itemsize
    max_rows = max(sub, (target_bytes // (lane * itemsize)) // sub * sub)
    r = min((rows // sub) * sub, max_rows)
    while r >= sub:
        if rows % r == 0:
            return r
        r -= sub
    return None


def _identity_copy(x):
    orig_shape = x.shape
    dtype = x.dtype
    n = x.size
    itemsize = jnp.dtype(dtype).itemsize

    common = dict(
        input_output_aliases={0: 0},
        cost_estimate=pl.CostEstimate(
            flops=0, transcendentals=0, bytes_accessed=2 * n * itemsize),
    )

    layout = _choose_layout(n, dtype) if n > 0 else None
    if layout is not None:
        lane, rows = layout
        x2d = x.reshape(rows, lane)
        block_rows = _choose_row_tile(rows, lane, dtype) or rows
        grid = (rows // block_rows,)
        out2d = pl.pallas_call(
            _copy_kernel,
            out_shape=jax.ShapeDtypeStruct((rows, lane), dtype),
            grid_spec=pltpu.PrefetchScalarGridSpec(
                num_scalar_prefetch=0,
                grid=grid,
                in_specs=[pl.BlockSpec((block_rows, lane), lambda i: (i, 0))],
                out_specs=pl.BlockSpec((block_rows, lane), lambda i: (i, 0)),
            ),
            compiler_params=pltpu.CompilerParams(
                # Row-tile axis is independent -> shard across TCs on v7x.
                dimension_semantics=("parallel",),
                # 4 x (<=8 MiB) double-buffered tiles + headroom; fits v7x 64 MiB.
                vmem_limit_bytes=40 * 1024 * 1024,
            ),
            **common,
        )(x2d)
        return out2d.reshape(orig_shape)

    # Ragged flat size (n not a multiple of 128): whole-array single block
    # (block_shape == array dims, so the (8,128) constraint does not apply).
    x2d = x.reshape(-1, orig_shape[-1]) if x.ndim >= 2 else x.reshape(1, -1)
    out2d = pl.pallas_call(
        _copy_kernel,
        out_shape=jax.ShapeDtypeStruct(x2d.shape, x2d.dtype),
        in_specs=[pl.BlockSpec(x2d.shape, lambda: (0, 0))],
        out_specs=pl.BlockSpec(x2d.shape, lambda: (0, 0)),
        compiler_params=pltpu.CompilerParams(
            vmem_limit_bytes=40 * 1024 * 1024,
        ),
        **common,
    )(x2d)
    return out2d.reshape(orig_shape)


# --------------------------------------------------------------------------
# Public wrapper (Finetuned.forward equivalent).
# --------------------------------------------------------------------------
def finetuned_forward(x):
    """Pallas equivalent of Finetuned.forward (identity pass-through)."""
    try:
        y = _identity_noop(x)
        jax.block_until_ready(y)  # force compile/run so lowering issues surface here
        return y
    except Exception:
        # Defensive fallback: proven lane-dense tiled copy path.
        return _identity_copy(x)


if __name__ == "__main__":
    key = jax.random.PRNGKey(0)
    # Small NCHW input consistent with an image-model forward signature.
    x = jax.random.normal(key, (2, 4, 16, 16), dtype=jnp.float32)

    y = finetuned_forward(x)
    y = jax.block_until_ready(y)

    # Sanity: identity semantics (the only well-defined behavior available).
    assert y.shape == x.shape and y.dtype == x.dtype
    assert bool(jnp.allclose(y, x))

    print("KERNEL_OK")
</pallas_src>

<mosaic_0001>
module attributes {stable_mosaic.version = 11 : i64} {
  func.func @_noop_kernel(%arg0: memref<2x4x16x16xf32, #tpu.memory_space<any>>, %arg1: memref<2x4x16x16xf32, #tpu.memory_space<any>>) attributes {dimension_semantics = [], scalar_prefetch = 0 : i64, scratch_operands = 0 : i64, tpu.core_type = #tpu.core_type<tc>} {
    return
  }
}

module attributes {stable_mosaic.version = 11 : i64} {
  func.func @_copy_kernel(%arg0: i32, %arg1: memref<8x256xf32, #tpu.memory_space<vmem>>, %arg2: memref<8x256xf32, #tpu.memory_space<vmem>>) attributes {dimension_semantics = [#tpu.dimension_semantics<parallel>], iteration_bounds = array<i64: 1>, scalar_prefetch = 0 : i64, scratch_operands = 0 : i64, tpu.core_type = #tpu.core_type<tc>, window_params = [{transform_indices = @transform_0, window_bounds = array<i64: 8, 256>}, {transform_indices = @transform_1, window_bounds = array<i64: 8, 256>}]} {
    %c0 = arith.constant 0 : index
    %c0_0 = arith.constant 0 : index
    %0 = vector.load %arg1[%c0, %c0_0] : memref<8x256xf32, #tpu.memory_space<vmem>>, vector<8x256xf32>
    %c0_1 = arith.constant 0 : index
    %c0_2 = arith.constant 0 : index
    %1 = vector.load %arg2[%c0_1, %c0_2] : memref<8x256xf32, #tpu.memory_space<vmem>>, vector<8x256xf32>
    tpu.vector_store %arg2[%c0_1, %c0_2], %0 {strides = array<i32>} : memref<8x256xf32, #tpu.memory_space<vmem>>, vector<8x256xf32>,
    return
  }
  func.func @transform_0(%arg0: i32) -> (i32, i32) {
    %c0_i32 = arith.constant 0 : i32
    %c0_i32_0 = arith.constant 0 : i32
    return %arg0, %c0_i32 : i32, i32
  }
  func.func @transform_1(%arg0: i32) -> (i32, i32) {
    %c0_i32 = arith.constant 0 : i32
    %c0_i32_0 = arith.constant 0 : i32
    return %arg0, %c0_i32 : i32, i32
  }
}

</mosaic_0001>

<bundles_post_ra>
// kernel: tpu_custom_call.1
= control target key start
LH: loop header
LB: loop body
LE: loop exit
PB: predicated region body
PF: predicated region fallthrough
CT: control target
= control target key end

     0   :  { %s16_s0 = inlined_call_operand.hbm [shape: f32[2,4,16,16], index: 0, kind: input, shape index: {}, may-alias: {0,1}]   ;;  %s17_s1 = inlined_call_operand.hbm [shape: f32[2,4,16,16], index: 1, kind: output, shape index: {}, may-alias: {0,1}]  }

// kernel: tpu_custom_call.1
= control target key start
LH: loop header
LB: loop body
LE: loop exit
PB: predicated region body
PF: predicated region fallthrough
CT: control target
= control target key end

     0   :  { %6 = vsyncpa [#allocation3], 0  ;;  %s104_s0 = inlined_call_operand.hbm [shape: f32[8,256], index: 0, kind: input, shape index: {}, may-alias: {0,1}]   ;;  %s105_s1 = inlined_call_operand.hbm [shape: f32[8,256], index: 1, kind: output, shape index: {}, may-alias: {0,1}]  }
   0x1   :  { %7 = vsyncpa [#allocation4], 0  ;;  %s86_s6 = smov [#allocation2]  }
   0x2   :  { %s14_s7 = sshll.u32 %s86_s6, 4  ;;  %s15_s7 = int_to_ptr.vmem [resolvable:$true] %s14_s7 }
   0x3   :  { %s50_s8 = scalar_lea.vmem %s15_s7, 256  ;;  %p55_p1 = scmp.lt.s32.totalorder %s15_s7, %s15_s7 }
   0x4   :  { %p51_p0 = scmp.ne.s32.totalorder %s15_s7, %s50_s8  ;;  %p56_p2 = scmp.lt.s32.totalorder %s50_s8, %s50_s8 }
   0x6   :  { %p57_p3 = por %p56_p2, %p55_p1 }
   0x8   :  { %p58_p4 = pnand %p57_p3, %p51_p0 }
   0xa   :  { %61 = shalt.err (!%p58_p4)
}
   0xb   :  { %17 = dma.hbm_to_vmem [thread:$0]  %s104_s0, 256, %s15_s7, [#allocation3]  }
   0xc   :  { %82 = dma.done.wait [#allocation3], 256  }
   0xd   :  { %83 = vsyncadd [#allocation3], 4294967040  ;;  %s87_s11 = smov [#allocation5]   ;;  %v21_v0 = vld [vmem:[#allocation2] sm:$0xff]  ;;  %v22_v1 = vld [vmem:[#allocation2 + $0x8] sm:$0xff] }
   0xe   :  { %s31_s12 = sshll.u32 %s87_s11, 4  ;;  %23 = vst [vmem:[#allocation5] sm:$0xff] %v21_v0  ;;  %24 = vst [vmem:[#allocation5 + $0x8] sm:$0xff] %v22_v1  ;;  %s32_s12 = int_to_ptr.vmem [resolvable:$true] %s31_s12 }
   0xf   :  { %s62_s13 = scalar_lea.vmem %s32_s12, 256  ;;  %p67_p6 = scmp.lt.s32.totalorder %s32_s12, %s32_s12 }
  0x10   :  { %p63_p5 = scmp.ne.s32.totalorder %s32_s12, %s62_s13  ;;  %p68_p7 = scmp.lt.s32.totalorder %s62_s13, %s62_s13 }
  0x12   :  { %p69_p8 = por %p68_p7, %p67_p6 }
  0x14   :  { %p70_p9 = pnand %p69_p8, %p63_p5 }
  0x16   :  { %73 = shalt.err (!%p70_p9)
}
  0x17   :  { %34 = dma.vmem_to_hbm [thread:$0]  %s32_s12, 256, %s105_s1, [#allocation4]  }
  0x18   :  { %84 = dma.done.wait [#allocation4], 256  }
  0x19   :  { %85 = vsyncadd [#allocation4], 4294967040 }
  0x1a   :  { %38 = vsyncpa [#allocation3], 1 }
  0x1b   :  { %39 = vsyncpa [#allocation4], 1 }

</bundles_post_ra>
